<compile_context>
chip_gen: v7x
topology: tpu7x:2x2x1
jax: 0.10.0
libtpu: 0.0.40
codegen_flags: <defaults>
</compile_context>

<pallas_src>
import functools

import jax
import jax.numpy as jnp
from jax import lax
from jax.experimental import pallas as pl
from jax.experimental.pallas import tpu as pltpu


def _vmem_budget_bytes():
    """Safe per-core VMEM ceiling: 75% of physical capacity (v7x has only 64 MiB)."""
    try:
        cap = pltpu.get_tpu_info().vmem_capacity_bytes
    except Exception:
        cap = 64 << 20  # most conservative generation (v7x)
    return int(0.75 * cap)


def _excite(pooled, w1_ref, b1_ref, w2_ref, b2_ref):
    """Linear -> ReLU6 -> Linear -> HardSwish, all in f32 (tiny)."""
    h = jnp.dot(pooled, w1_ref[...], preferred_element_type=jnp.float32) + b1_ref[...]
    h = jnp.clip(h, 0.0, 6.0)                                   # ReLU6
    s = jnp.dot(h, w2_ref[...], preferred_element_type=jnp.float32) + b2_ref[...]
    return s * jnp.clip(s + 3.0, 0.0, 6.0) * (1.0 / 6.0)        # HardSwish


# ----------------------------------------------------------------------------
# Path A: fused single pass (read x once, write out once).
# ----------------------------------------------------------------------------
def _se_fused_kernel(inv_hw, x_ref, w1_ref, b1_ref, w2_ref, b2_ref, o_ref):
    # x_ref : (Bt, C, HW)   w1_ref: (C, mid)   b1_ref: (1, mid)
    # w2_ref: (mid, C)      b2_ref: (1, C)     o_ref : (Bt, C, HW)
    # squeeze: global average pool; accumulate in f32 so bf16 inputs stay accurate.
    pooled = jnp.sum(x_ref[...].astype(jnp.float32), axis=-1) * inv_hw        # (Bt, C)
    s = _excite(pooled, w1_ref, b1_ref, w2_ref, b2_ref)                        # (Bt, C)
    # scale: re-read x from VMEM (keep live ranges short across the matmuls).
    o_ref[...] = (x_ref[...] * s[:, :, None].astype(x_ref.dtype)).astype(o_ref.dtype)


# ----------------------------------------------------------------------------
# Path B (fallback): pass 1 = pool + excite -> s:(B,1,C);  pass 2 = tiled scale.
# ----------------------------------------------------------------------------
def _se_pool_excite_kernel(inv_hw, hw, thw,
                           x_ref, w1_ref, b1_ref, w2_ref, b2_ref, s_ref, acc_ref):
    # x_ref: (1, C, thw)   s_ref: (1, 1, C) f32   acc_ref: (1, C) f32 scratch
    t = pl.program_id(1)

    @pl.when(t == 0)
    def _():
        acc_ref[...] = jnp.zeros_like(acc_ref)

    x = x_ref[...].astype(jnp.float32)
    if hw % thw != 0:
        # Ragged tail tile: out-of-bounds lanes are undefined on read -> mask them.
        idx = lax.broadcasted_iota(jnp.int32, x.shape, 2)
        x = jnp.where(idx < (hw - t * thw), x, 0.0)
    acc_ref[...] += jnp.sum(x, axis=-1)

    @pl.when(t == pl.num_programs(1) - 1)
    def _():
        pooled = acc_ref[...] * inv_hw                                         # (1, C)
        s = _excite(pooled, w1_ref, b1_ref, w2_ref, b2_ref)                    # (1, C)
        s_ref[...] = s[:, None, :]                                             # (1, 1, C)


def _se_scale_kernel(x_ref, s_ref, o_ref):
    # x_ref: (1, C, thw)   s_ref: (1, 1, C)   o_ref: (1, C, thw)
    s = s_ref[...][:, 0, :, None].astype(x_ref.dtype)                          # (1, C, 1)
    o_ref[...] = (x_ref[...] * s).astype(o_ref.dtype)


# ----------------------------------------------------------------------------
# Wrapper
# ----------------------------------------------------------------------------
def squeeze_and_excite(x, w1, b1, w2, b2):
    """x: (B, C, H, W) NCHW.  w1: (mid, C), b1: (mid,), w2: (C, mid), b2: (C,)."""
    b, c, h, w = x.shape
    hw = h * w
    mid = w1.shape[0]
    inv_hw = 1.0 / float(hw)

    x3 = x.reshape(b, c, hw)               # bitcast, no copy; no padding needed
    w1t = w1.T                             # (C, mid) -> plain matmuls in-kernel
    b1r = b1.reshape(1, mid)
    w2t = w2.T                             # (mid, C)
    b2r = b2.reshape(1, c)

    itemsize = jnp.dtype(x.dtype).itemsize
    slab_bytes = c * hw * itemsize                      # one image as (C, HW)
    weight_bytes = (2 * c * mid + mid + c) * 4
    budget = _vmem_budget_bytes()

    def fused_vmem(bt):
        # 2x double-buffered input block + 2x output block + resident weights + slack.
        return 4 * bt * slab_bytes + 2 * weight_bytes + (2 << 20)

    if b >= 2 and fused_vmem(1) <= budget:
        # ---------------- fused single pass ----------------
        # Pack images per step (~2 MiB blocks) to amortize per-step overhead and
        # widen the excite matmul, but keep >= 2 grid steps so the DMA pipeline
        # still overlaps compute.
        bt = 1
        max_bt = max(1, b // 2)
        for cand in range(1, max_bt + 1):
            if b % cand == 0 and cand * slab_bytes <= (2 << 20) and fused_vmem(cand) <= budget:
                bt = cand

        vmem_limit = int(min(max(fused_vmem(bt), 32 << 20), budget))
        cost = pl.CostEstimate(
            flops=int(b * (4 * c * mid + 2 * c * hw)),
            transcendentals=0,
            bytes_accessed=int(2 * b * slab_bytes + weight_bytes),
        )

        out3 = pl.pallas_call(
            functools.partial(_se_fused_kernel, inv_hw),
            out_shape=jax.ShapeDtypeStruct((b, c, hw), x3.dtype),
            grid=(b // bt,),
            in_specs=[
                pl.BlockSpec((bt, c, hw), lambda i: (i, 0, 0)),   # x slab
                pl.BlockSpec((c, mid), lambda i: (0, 0)),         # weights: resident
                pl.BlockSpec((1, mid), lambda i: (0, 0)),
                pl.BlockSpec((mid, c), lambda i: (0, 0)),
                pl.BlockSpec((1, c), lambda i: (0, 0)),
            ],
            out_specs=pl.BlockSpec((bt, c, hw), lambda i: (i, 0, 0)),
            compiler_params=pltpu.CompilerParams(
                dimension_semantics=("parallel",),
                vmem_limit_bytes=vmem_limit,
            ),
            cost_estimate=cost,
        )(x3, w1t, b1r, w2t, b2r)
        return out3.reshape(b, c, h, w)

    # ---------------- two-pass fallback ----------------
    # Used for B == 1 (restores pipelining / v7x 2-TC occupancy) or when a whole
    # image slab exceeds the VMEM budget.  Reads x twice (3 HBM passes vs 2).
    if hw <= 128:
        thw = hw
    else:
        thw_cap = max(128, (budget // (6 * c * itemsize)) // 128 * 128)
        thw = int(min(((hw + 127) // 128) * 128, thw_cap, 64 * 128))
    # TODO(synk): if even a 128-lane tile per channel-slab exceeds the VMEM budget
    # (astronomically large C), add channel tiling to both passes.
    n_t = pl.cdiv(hw, thw)
    tile_bytes = c * thw * itemsize
    vmem1 = int(min(max(2 * tile_bytes + 2 * weight_bytes + (2 << 20), 32 << 20), budget))
    vmem2 = int(min(max(4 * tile_bytes + (2 << 20), 32 << 20), budget))

    # Pass 1: pool + excite -> s of shape (B, 1, C) f32.
    s_arr = pl.pallas_call(
        functools.partial(_se_pool_excite_kernel, inv_hw, hw, thw),
        out_shape=jax.ShapeDtypeStruct((b, 1, c), jnp.float32),
        grid=(b, n_t),
        in_specs=[
            pl.BlockSpec((1, c, thw), lambda i, t: (i, 0, t)),
            pl.BlockSpec((c, mid), lambda i, t: (0, 0)),
            pl.BlockSpec((1, mid), lambda i, t: (0, 0)),
            pl.BlockSpec((mid, c), lambda i, t: (0, 0)),
            pl.BlockSpec((1, c), lambda i, t: (0, 0)),
        ],
        out_specs=pl.BlockSpec((1, 1, c), lambda i, t: (i, 0, 0)),
        scratch_shapes=[pltpu.VMEM((1, c), jnp.float32)],
        compiler_params=pltpu.CompilerParams(
            dimension_semantics=("parallel", "arbitrary"),
            vmem_limit_bytes=vmem1,
        ),
    )(x3, w1t, b1r, w2t, b2r)

    # Pass 2: spatially tiled scale; both grid axes independent ("parallel").
    out3 = pl.pallas_call(
        _se_scale_kernel,
        out_shape=jax.ShapeDtypeStruct((b, c, hw), x3.dtype),
        grid=(b, n_t),
        in_specs=[
            pl.BlockSpec((1, c, thw), lambda i, t: (i, 0, t)),
            pl.BlockSpec((1, 1, c), lambda i, t: (i, 0, 0)),
        ],
        out_specs=pl.BlockSpec((1, c, thw), lambda i, t: (i, 0, t)),
        compiler_params=pltpu.CompilerParams(
            dimension_semantics=("parallel", "parallel"),
            vmem_limit_bytes=vmem2,
        ),
    )(x3, s_arr)
    return out3.reshape(b, c, h, w)


# ----------------------------------------------------------------------------
# Self-test
# ----------------------------------------------------------------------------
if __name__ == "__main__":
    def run_case(B, C, H, W, divide, key, dtype=jnp.float32, atol=1e-5, rtol=1e-5):
        mid = max(1, C // divide)
        kx, kw1, kb1, kw2, kb2 = jax.random.split(key, 5)
        x = jax.random.normal(kx, (B, C, H, W), dtype=jnp.float32)
        w1 = jax.random.normal(kw1, (mid, C), dtype=jnp.float32) * 0.1   # Linear(C -> mid)
        b1 = jax.random.normal(kb1, (mid,), dtype=jnp.float32) * 0.1
        w2 = jax.random.normal(kw2, (C, mid), dtype=jnp.float32) * 0.1   # Linear(mid -> C)
        b2 = jax.random.normal(kb2, (C,), dtype=jnp.float32) * 0.1

        # Pure-JAX reference of the exact PyTorch forward (in f32).
        pooled = jnp.mean(x, axis=(2, 3))                      # AvgPool2d(k=H) -> view(b,-1)
        hdn = jnp.clip(pooled @ w1.T + b1, 0.0, 6.0)           # Linear + ReLU6
        s = hdn @ w2.T + b2                                    # Linear
        s = s * jnp.clip(s + 3.0, 0.0, 6.0) / 6.0              # HardSwish
        ref = x * s[:, :, None, None]                          # view(b,c,1,1) * x

        out = squeeze_and_excite(x.astype(dtype), w1, b1, w2, b2)
        jax.block_until_ready(out)
        assert out.shape == x.shape and out.dtype == dtype
        assert jnp.allclose(out.astype(jnp.float32), ref, atol=atol, rtol=rtol), \
            f"mismatch vs reference for shape {(B, C, H, W)} dtype={dtype}"

    key = jax.random.PRNGKey(0)
    k1, k2, k3, k4, k5 = jax.random.split(key, 5)
    run_case(2, 8, 16, 16, 4, k1)                               # fused path, lane-aligned HW
    run_case(2, 8, 14, 14, 4, k2)                               # fused path, ragged HW (196)
    run_case(1, 8, 20, 20, 4, k3)                               # two-pass (B=1), masked tail
    run_case(1, 16, 96, 96, 4, k4)                              # two-pass, multiple HW tiles
    run_case(2, 8, 16, 16, 4, k5, dtype=jnp.bfloat16,
             atol=5e-2, rtol=5e-2)                              # bf16 I/O, f32 pool/excite
    print("KERNEL_OK")
</pallas_src>

<mosaic_0001>
module attributes {stable_mosaic.version = 11 : i64} {
  func.func @_se_fused_kernel(%arg0: i32, %arg1: memref<1x8x256xf32, #tpu.memory_space<vmem>>, %arg2: memref<8x2xf32, #tpu.memory_space<vmem>>, %arg3: memref<1x2xf32, #tpu.memory_space<vmem>>, %arg4: memref<2x8xf32, #tpu.memory_space<vmem>>, %arg5: memref<1x8xf32, #tpu.memory_space<vmem>>, %arg6: memref<1x8x256xf32, #tpu.memory_space<vmem>>) attributes {dimension_semantics = [#tpu.dimension_semantics<parallel>], iteration_bounds = array<i64: 2>, scalar_prefetch = 0 : i64, scratch_operands = 0 : i64, tpu.core_type = #tpu.core_type<tc>, window_params = [{transform_indices = @transform_0, window_bounds = array<i64: 1, 8, 256>}, {pipeline_mode = #tpu.pipeline_mode<synchronous>, transform_indices = @transform_1, window_bounds = array<i64: 8, 2>}, {pipeline_mode = #tpu.pipeline_mode<synchronous>, transform_indices = @transform_2, window_bounds = array<i64: 1, 2>}, {pipeline_mode = #tpu.pipeline_mode<synchronous>, transform_indices = @transform_3, window_bounds = array<i64: 2, 8>}, {pipeline_mode = #tpu.pipeline_mode<synchronous>, transform_indices = @transform_4, window_bounds = array<i64: 1, 8>}, {transform_indices = @transform_5, window_bounds = array<i64: 1, 8, 256>}]} {
    %c0 = arith.constant 0 : index
    %c0_0 = arith.constant 0 : index
    %c0_1 = arith.constant 0 : index
    %0 = vector.load %arg1[%c0, %c0_0, %c0_1] : memref<1x8x256xf32, #tpu.memory_space<vmem>>, vector<1x8x256xf32>
    %cst = arith.constant dense<0.000000e+00> : vector<1x8xf32>
    %1 = vector.multi_reduction <add>, %0, %cst [2] : vector<1x8x256xf32> to vector<1x8xf32>
    %cst_2 = arith.constant 3.906250e-03 : f32
    %2 = vector.broadcast %cst_2 : f32 to vector<1x8xf32>
    %3 = arith.mulf %1, %2 : vector<1x8xf32>
    %c0_3 = arith.constant 0 : index
    %c0_4 = arith.constant 0 : index
    %4 = vector.load %arg2[%c0_3, %c0_4] : memref<8x2xf32, #tpu.memory_space<vmem>>, vector<8x2xf32>
    %cst_5 = arith.constant dense<0.000000e+00> : vector<1x2xf32>
    %5 = tpu.matmul %3, %4, %cst_5 {dimension_numbers = #tpu.dot_dimension_numbers<[1], [0], [0], [1], [0, 0, 1, 1], [], []>} : vector<1x8xf32>, vector<8x2xf32>, vector<1x2xf32> -> vector<1x2xf32>
    %c0_6 = arith.constant 0 : index
    %c0_7 = arith.constant 0 : index
    %6 = vector.load %arg3[%c0_6, %c0_7] : memref<1x2xf32, #tpu.memory_space<vmem>>, vector<1x2xf32>
    %7 = arith.addf %5, %6 : vector<1x2xf32>
    %cst_8 = arith.constant 0.000000e+00 : f32
    %cst_9 = arith.constant 6.000000e+00 : f32
    %8 = vector.broadcast %cst_8 : f32 to vector<1x2xf32>
    %9 = arith.maximumf %8, %7 : vector<1x2xf32>
    %10 = vector.broadcast %cst_9 : f32 to vector<1x2xf32>
    %11 = arith.minimumf %10, %9 : vector<1x2xf32>
    %c0_10 = arith.constant 0 : index
    %c0_11 = arith.constant 0 : index
    %12 = vector.load %arg4[%c0_10, %c0_11] : memref<2x8xf32, #tpu.memory_space<vmem>>, vector<2x8xf32>
    %cst_12 = arith.constant dense<0.000000e+00> : vector<1x8xf32>
    %13 = tpu.matmul %11, %12, %cst_12 {dimension_numbers = #tpu.dot_dimension_numbers<[1], [0], [0], [1], [0, 0, 1, 1], [], []>} : vector<1x2xf32>, vector<2x8xf32>, vector<1x8xf32> -> vector<1x8xf32>
    %c0_13 = arith.constant 0 : index
    %c0_14 = arith.constant 0 : index
    %14 = vector.load %arg5[%c0_13, %c0_14] : memref<1x8xf32, #tpu.memory_space<vmem>>, vector<1x8xf32>
    %15 = arith.addf %13, %14 : vector<1x8xf32>
    %cst_15 = arith.constant 3.000000e+00 : f32
    %16 = vector.broadcast %cst_15 : f32 to vector<1x8xf32>
    %17 = arith.addf %15, %16 : vector<1x8xf32>
    %cst_16 = arith.constant 0.000000e+00 : f32
    %cst_17 = arith.constant 6.000000e+00 : f32
    %18 = vector.broadcast %cst_16 : f32 to vector<1x8xf32>
    %19 = arith.maximumf %18, %17 : vector<1x8xf32>
    %20 = vector.broadcast %cst_17 : f32 to vector<1x8xf32>
    %21 = arith.minimumf %20, %19 : vector<1x8xf32>
    %22 = arith.mulf %15, %21 : vector<1x8xf32>
    %cst_18 = arith.constant 0.166666672 : f32
    %23 = vector.broadcast %cst_18 : f32 to vector<1x8xf32>
    %24 = arith.mulf %22, %23 : vector<1x8xf32>
    %c0_19 = arith.constant 0 : index
    %c0_20 = arith.constant 0 : index
    %c0_21 = arith.constant 0 : index
    %25 = vector.load %arg1[%c0_19, %c0_20, %c0_21] : memref<1x8x256xf32, #tpu.memory_space<vmem>>, vector<1x8x256xf32>
    %26 = vector.shape_cast %24 : vector<1x8xf32> to vector<1x8x1xf32>
    %27 = vector.broadcast %26 : vector<1x8x1xf32> to vector<1x8x256xf32>
    %28 = arith.mulf %25, %27 : vector<1x8x256xf32>
    %c0_22 = arith.constant 0 : index
    %c0_23 = arith.constant 0 : index
    %c0_24 = arith.constant 0 : index
    %29 = vector.load %arg6[%c0_22, %c0_23, %c0_24] : memref<1x8x256xf32, #tpu.memory_space<vmem>>, vector<1x8x256xf32>
    tpu.vector_store %arg6[%c0_22, %c0_23, %c0_24], %28 {strides = array<i32>} : memref<1x8x256xf32, #tpu.memory_space<vmem>>, vector<1x8x256xf32>,
    return
  }
  func.func @transform_0(%arg0: i32) -> (i32, i32, i32) {
    %c0_i32 = arith.constant 0 : i32
    %c0_i32_0 = arith.constant 0 : i32
    %c0_i32_1 = arith.constant 0 : i32
    return %arg0, %c0_i32, %c0_i32_0 : i32, i32, i32
  }
  func.func @transform_1(%arg0: i32) -> (i32, i32) {
    %c0_i32 = arith.constant 0 : i32
    %c0_i32_0 = arith.constant 0 : i32
    %c0_i32_1 = arith.constant 0 : i32
    return %c0_i32, %c0_i32_0 : i32, i32
  }
  func.func @transform_2(%arg0: i32) -> (i32, i32) {
    %c0_i32 = arith.constant 0 : i32
    %c0_i32_0 = arith.constant 0 : i32
    %c0_i32_1 = arith.constant 0 : i32
    return %c0_i32, %c0_i32_0 : i32, i32
  }
  func.func @transform_3(%arg0: i32) -> (i32, i32) {
    %c0_i32 = arith.constant 0 : i32
    %c0_i32_0 = arith.constant 0 : i32
    %c0_i32_1 = arith.constant 0 : i32
    return %c0_i32, %c0_i32_0 : i32, i32
  }
  func.func @transform_4(%arg0: i32) -> (i32, i32) {
    %c0_i32 = arith.constant 0 : i32
    %c0_i32_0 = arith.constant 0 : i32
    %c0_i32_1 = arith.constant 0 : i32
    return %c0_i32, %c0_i32_0 : i32, i32
  }
  func.func @transform_5(%arg0: i32) -> (i32, i32, i32) {
    %c0_i32 = arith.constant 0 : i32
    %c0_i32_0 = arith.constant 0 : i32
    %c0_i32_1 = arith.constant 0 : i32
    return %arg0, %c0_i32, %c0_i32_0 : i32, i32, i32
  }
}

</mosaic_0001>

<bundles_post_ra>
// kernel: tpu_custom_call.1
= control target key start
LH: loop header
LB: loop body
LE: loop exit
PB: predicated region body
PF: predicated region fallthrough
CT: control target
= control target key end

     0   :  { %10 = vsyncpa [#allocation3], 0  ;;  %s902_s0 = inlined_call_operand.hbm [shape: f32[2,8,256], index: 0, kind: input, shape index: {}]   ;;  %s903_s1 = inlined_call_operand.vmem [shape: f32[8,2], index: 1, kind: input, shape index: {}]   ;;  %s904_s2 = inlined_call_operand.vmem [shape: f32[1,2], index: 2, kind: input, shape index: {}]   ;;  %s905_s3 = inlined_call_operand.vmem [shape: f32[2,8], index: 3, kind: input, shape index: {}]   ;;  %s906_s4 = inlined_call_operand.vmem [shape: f32[1,8], index: 4, kind: input, shape index: {}]   ;;  %s907_s5 = inlined_call_operand.hbm [shape: f32[2,8,256], index: 5, kind: output, shape index: {}]  }
   0x1   :  { %12 = vsyncpa [#allocation3 + $0x1], 0 }
   0x2   :  { %13 = vsyncpa [#allocation4], 0 }
   0x3   :  { %15 = vsyncpa [#allocation4 + $0x1], 0  ;;  %s725_s18 = smov 0   ;;  %s727_s19 = smov 0  }
   0x4   :  { %s729_s20 = smov 0   ;;  %s731_s21 = smov 0  }
   0x5 LB: > { %s746_s22 = sadd.s32 4294967295, %s689_s21   ;;  %s512_s23 = sadd.s32 4294967294, %s689_s21   ;;  %s689_s21 = sphi %s731_s21, %s922_s21   ;;  %s685_s20 = sphi %s729_s20, %s921_s20   ;;  %s681_s19 = sphi %s727_s19, %s920_s19   ;;  %s677_s18 = sphi %s725_s18, %s919_s18  }
   0x6   : > { %s750_s24 = sadd.s32 1, %s689_s21   ;;  %s28_s25 = sadd.s32 1, %s685_s20 }
   0x7   : > { %s25_s26 = ssub.s32 %s689_s21, %s750_s24  ;;  %p35_p0 = scmp.ne.s32.totalorder %s685_s20, %s681_s19 }
   0x8   : > { %p26_p1 = scmp.eq.s32.totalorder %s25_s26, 0  ;;  %p36_p2 = scmp.eq.s32.totalorder %s689_s21, 0 }
   0x9   : > { %p41_p3 = scmp.ne.s32.totalorder %s681_s19, %s677_s18  ;;  %p42_p4 = scmp.eq.s32.totalorder %s746_s22, 0 }
   0xa   : > { %s762_s27 = scalar_select %p26_p1, %s685_s20, %s28_s25  }
   0xb   : > { %p764_p5 = por %p36_p2, %p35_p0  ;;  %p768_p6 = por %p42_p4, %p41_p3 }
   0xc   : > { %p149_p7 = scmp.eq.s32.totalorder %s746_s22, 1  ;;  %p155_p8 = scmp.eq.s32.totalorder %s512_s23, 1 }
   0xd   : > { %p557_p10 = scmp.lt.s32.totalorder %s689_s21, 2  ;;  %s187_s7 = sand.u32 1, %s685_s20  }
   0xe   : > { %p775_p11 = por %p149_p7, %p35_p0  ;;  %p779_p12 = por %p155_p8, %p41_p3 }
   0xf   : > { %s529_s8 = sshll.u32 %s689_s21, 8  ;;  %s515_s9 = sshll.u32 %s187_s7, 4 }
  0x10   : > { %s911_s30 = scalar_select %p775_p11, 1, 0 }
  0x11   : > { %s912_s6 = scalar_select %p779_p12, 1, 0 }
  0x12   : > { %s788_s12 = scalar_lea.hbm %s902_s0, %s529_s8  ;;  %s191_s13 = scalar_lea.vmem [#allocation2], %s515_s9 }
  0x13   : > { %s199_s14 = sshll.u32 %s191_s13, 4  ;;  %p792_p13 = pnand %p557_p10, %p764_p5  ;;  %s796_s14 = int_to_ptr.vmem [resolvable:$true] %s199_s14 }
  0x14   : > { %s188_s16 = scalar_lea.sflag [#allocation3], %s187_s7  ;;  %s593_s17 = scalar_lea.hbm %s788_s12, 256 }
  0x15   : > { %p594_p2 = scmp.ne.s32.totalorder %s788_s12, %s593_s17  ;;  %p595_p3 = pneg %p792_p13 }
  0x16   : > { %s598_s26 = scalar_lea.hbm %s902_s0, 512  ;;  %p599_p5 = scmp.lt.u32.totalorder %s788_s12, %s902_s0 }
  0x17   : > { %p596_p4 = pnand %p595_p3, %p594_p2  ;;  %p600_p8 = scmp.lt.u32.totalorder %s598_s26, %s593_s17 }
  0x18   : > { %p602_p9 = scmp.lt.u32.totalorder %s593_s17, %s788_s12 }
  0x19   : > { %p597_p7 = pneg %p596_p4  ;;  %p601_p10 = por %p600_p8, %p599_p5 }
  0x1b   : > { %p603_p0 = por %p602_p9, %p601_p10 }
  0x1d   : > { %p604_p1 = pnand %p603_p0, %p597_p7 }
  0x1f   : > { %607 = shalt.err (!%p604_p1)
}
  0x20   : > { %s608_s7 = scalar_lea.vmem %s796_s14, 256  ;;  %s691_s9 = smov [#allocation2]  }
  0x21   : > { %p609_p2 = scmp.ne.s32.totalorder %s796_s14, %s608_s7  ;;  %s613_s10 = sshll.u32 %s691_s9, 4  ;;  %s614_s10 = int_to_ptr.vmem [resolvable:$false] %s613_s10 }
  0x22   : > { %s615_s11 = scalar_lea.vmem %s614_s10, 512  ;;  %p616_p11 = scmp.lt.s32.totalorder %s796_s14, %s614_s10 }
  0x23   : > { %p611_p4 = pnand %p609_p2, %p595_p3  ;;  %p617_p5 = scmp.lt.s32.totalorder %s615_s11, %s608_s7 }
  0x25   : > { %p612_p12 = pneg %p611_p4  ;;  %p618_p8 = por %p617_p5, %p616_p11 }
  0x27   : > { %p619_p9 = pnand %p618_p8, %p612_p12 }
  0x29   : > { %622 = shalt.err (!%p619_p9)
}
  0x2a   : > { %552 = dma.hbm_to_vmem [thread:$0]  (!%p792_p13), %s788_s12, 256, %s796_s14, %s188_s16  }
  0x2b   : > { %p914_p0 = scmp.lt.s32.totalorder %s689_s21, 3  ;;  %p915_p1 = scmp.ge.s32.totalorder %s689_s21, 1 }
  0x2d   : > { %p205_p3 = pnand %p915_p1, %p914_p0 }
  0x2e   : > { %s830_s13 = sand.u32 (!%p205_p3), 1, %s681_s19  }
  0x2f   : > { %208 = sbr.rel (%p205_p3) target bundleno = 779 (0x30b), region = 40  ;;  %s519_s17 = sshll.u32 (!%p205_p3), %s830_s13, 4 }
  0x30   : > { %s211_s23 = scalar_lea.sflag (!%p205_p3), [#allocation3], %s830_s13  ;;  %s214_s15 = scalar_lea.vmem (!%p205_p3), [#allocation2], %s519_s17 }
  0x36   : > { %668 = dma.done.wait (%p768_p6), %s211_s23, 256  }
  0x37   : > { %670 = vsyncadd (%p768_p6), %s211_s23, 4294967040  ;;  %v241_v0 = vld [vmem:[%s214_s15] sm:$0xff]  ;;  %v242_v1 = vld [vmem:[%s214_s15 + $0x8] sm:$0xff]  ;;  %v692_v3 = vmov 0.0   ;;  %vm693_vm0 = vmmov 0   ;;  %v250_v5 = vlaneseq  ;;  %vm256_vm1 = vcmask 64512  }
  0x38   : > { %v243_v2 = vadd.f32 %v242_v1, %v241_v0  ;;  %535 = vmatprep.subr.mxu0 %v692_v3  ;;  %v247_v4 = vld [vmem:[%s903_s1] sm:$0xff]  ;;  %540 = vmatprep.subr.mxu1 %v692_v3  ;;  %vm337_vm2 = vcmask 1041408   ;;  %vm333_vm3 = vcmask 15360   ;;  %s530_s7 = sshll.u32 %s746_s22, 8  ;;  %s240_s9 = scalar_lea.vmem [#allocation5], %s519_s17 }
  0x39   : > { %536 = vmatpush3.msra.mxu0 %v247_v4  ;;  %537 = vmatprep.mubr.msk.f32.mxu0 %vm693_vm0, %v692_v3  ;;  %v251_v6 = vand.u32 127, %v250_v5  ;;  %v253_v7 = vshrl.u32 %v250_v5, 7  ;;  %v331_v12 = vld [vmem:[%s905_s3] sm:$0x3]  ;;  %s442_s10 = sshll.u32 %s240_s9, 4  ;;  %s858_s15 = scalar_lea.hbm %s907_s5, %s530_s7  ;;  %s860_s10 = int_to_ptr.vmem [resolvable:$true] %s442_s10 }
  0x3a   : > { %244 = vadd.xlane.f32.xlu0 %v243_v2  ;;  %542 = vmatprep.mubr.msk.f32.mxu1 %vm693_vm0, %v692_v3  ;;  %v248_v13 = vld [vmem:[%s904_s2] sm:$0x1]  ;;  %s428_s12 = scalar_lea.sflag [#allocation4], %s830_s13  ;;  %s623_s22 = scalar_lea.vmem %s860_s10, 256 }
  0x3b   : > { %v254_v8 = vsub.s32 %v251_v6, %v253_v7  ;;  %541 = vmatpush3.msk.msra.mxu1 %vm337_vm2, %v331_v12  ;;  %v332_v19 = vld [vmem:[%s906_s4] sm:$0x1]  ;;  %v418_v27 = vsub.s32 0, %v253_v7  ;;  %p624_p6 = scmp.ne.s32.totalorder %s860_s10, %s623_s22  ;;  %p916_p11 = scmp.ne.s32.totalorder %s911_s30, 0 }
  0x3c   : > { %s694_s17 = smov [#allocation5]  }
  0x3d   : > { %p625_p12 = pnand %p624_p6, %p916_p11  ;;  %s627_s14 = sshll.u32 %s694_s17, 4  ;;  %s628_s14 = int_to_ptr.vmem [resolvable:$false] %s627_s14 }
  0x3e   : > { %s629_s29 = scalar_lea.vmem %s628_s14, 512  ;;  %p630_p7 = scmp.lt.s32.totalorder %s860_s10, %s628_s14 }
  0x3f   : > { %p626_p13 = pneg %p625_p12  ;;  %p631_p10 = scmp.lt.s32.totalorder %s629_s29, %s623_s22 }
  0x41   : > { %p632_p2 = por %p631_p10, %p630_p7 }
  0x43   : > { %p633_p4 = pnand %p632_p2, %p626_p13 }
  0xc7   : > { %v245_v9 = vpop.xlane.xlu0 %244 }
  0xc8   : > { %v246_v10 = vmul.f32 0.00390625, %v245_v9 }
  0xca   : > { %v255_v11 = vrot.slane %v246_v10, %v254_v8 }
  0xcc   : > { %538 = vmatmul.mubr.msk.f32.vlgmr.msra.gmra.mrb[0].mxu0 %vm256_vm1, %v255_v11 }
 0x19f   : > { %v325_v14 = vpop.f32.mrb[0].mxu0 }
 0x1a0   : > { %v326_v15 = vadd.f32 %v325_v14, %v248_v13  ;;  %v539_v16 = vpop.f32.mrb[1].mxu0 }
 0x1a2   : > { %v329_v17 = vmax.f32 %v326_v15, 0.0 }
 0x1a4   : > { %v330_v18 = vmin.f32 %v329_v17, 6.0 }
 0x1a6   : > { %543 = vmatmul.mubr.msk.f32.vlgmr.msra.gmra.mrb[0].mxu1 %vm333_vm3, %v330_v18 }
 0x279   : > { %v407_v20 = vpop.f32.mrb[0].mxu1 }
 0x27a   : > { %v408_v21 = vadd.f32 %v407_v20, %v332_v19  ;;  %v544_v22 = vpop.f32.mrb[1].mxu1 }
 0x27c   : > { %v411_v23 = vadd.f32 3.0, %v408_v21 }
 0x27e   : > { %v412_v24 = vmax.f32 %v411_v23, 0.0 }
 0x280   : > { %v413_v25 = vmin.f32 %v412_v24, 6.0 }
 0x282   : > { %v414_v26 = vmul.f32 %v413_v25, %v408_v21 }
 0x284   : > { %v415_v28 = vmul.f32 0.16666667, %v414_v26 }
 0x286   : > { %v419_v29 = vrot.slane %v415_v28, %v418_v27 }
 0x288   : > { %421 = vbcast.lane.b32.xlu0 %v419_v29, 256 }
 0x2fa   : > { %v422_v30 = vpop.permute.xlu0 %421 }
 0x2fb   : > { %v423_v31 = vmul.f32 %v422_v30, %v241_v0  ;;  %v424_v32 = vmul.f32 %v422_v30, %v242_v1 }
 0x2fd   : > { %425 = vst [vmem:[%s240_s9] sm:$0xff] %v423_v31  ;;  %426 = vst [vmem:[%s240_s9 + $0x8] sm:$0xff] %v424_v32 }
 0x2fe   : > { %636 = shalt.err (!%p633_p4)
}
 0x2ff   : > { %s637_s13 = scalar_lea.hbm %s858_s15, 256  ;;  %s641_s26 = scalar_lea.hbm %s907_s5, 512 }
 0x300   : > { %p638_p5 = scmp.ne.s32.totalorder %s858_s15, %s637_s13  ;;  %p642_p0 = scmp.lt.u32.totalorder %s858_s15, %s907_s5 }
 0x301   : > { %p643_p1 = scmp.lt.u32.totalorder %s641_s26, %s637_s13  ;;  %p645_p6 = scmp.lt.u32.totalorder %s637_s13, %s858_s15 }
 0x302   : > { %p639_p8 = pnand %p638_p5, %p916_p11 }
 0x303   : > { %p644_p3 = por %p643_p1, %p642_p0 }
 0x304   : > { %p640_p9 = pneg %p639_p8 }
 0x305   : > { %p646_p12 = por %p645_p6, %p644_p3 }
 0x307   : > { %p647_p13 = pnand %p646_p12, %p640_p9 }
 0x309   : > { %650 = shalt.err (!%p647_p13)
}
 0x30a   : > { %547 = dma.vmem_to_hbm [thread:$0]  (%p916_p11), %s860_s10, 256, %s858_s15, %s428_s12  }
 0x30b PF: > { %s454_s7 = sand.u32 1, %s677_s18   ;;  %p917_p7 = scmp.ne.s32.totalorder %s912_s6, 0 }
 0x30c   : > { %p918_p10 = scmp.ge.s32.totalorder %s689_s21, 2  ;;  %s455_s9 = scalar_lea.sflag [#allocation4], %s454_s7 }
 0x30e   : > { %p554_p2 = pnand %p918_p10, %p917_p7 }
 0x310   : > { %672 = dma.done.wait (!%p554_p2), %s455_s9, 256  }
 0x311   : > { %674 = vsyncadd (!%p554_p2), %s455_s9, 4294967040  ;;  %p18_p4 = scmp.ge.s32.totalorder %s750_s24, 4   ;;  %s919_s18 = smov %s681_s19 }
 0x312   : > { %s920_s19 = smov %s685_s20  ;;  %s921_s20 = smov %s762_s27 }
 0x313   : > { %s922_s21 = smov %s750_s24  ;;  %20 = sbr.rel (!%p18_p4) target bundleno = 5 (0x5), region = 85 }
 0x31a   :  { %460 = vsyncpa [#allocation3], 1 }
 0x31b   :  { %462 = vsyncpa [#allocation3 + $0x1], 1 }
 0x31c   :  { %463 = vsyncpa [#allocation4], 1 }
 0x31d   :  { %465 = vsyncpa [#allocation4 + $0x1], 1 }

</bundles_post_ra>
